<compile_context>
chip_gen: v6e
topology: v6e:2x2x1
jax: 0.10.0
libtpu: 0.0.40
codegen_flags: <defaults>
</compile_context>

<pallas_src>
import functools
import math

import jax
import jax.numpy as jnp
import numpy as np
from jax import lax
from jax.experimental import pallas as pl
from jax.experimental.pallas import tpu as pltpu

_MIB = 1024 * 1024


# ---------------------------------------------------------------------------
# Hardware-aware sizing helpers
# ---------------------------------------------------------------------------

@functools.lru_cache(maxsize=None)
def _hw_params():
    """(vmem_limit_bytes, per_buffer_tile_target_bytes, num_tensorcores)."""
    vmem_cap = 0
    n_cores = 1
    try:
        info = pltpu.get_tpu_info()
        vmem_cap = int(getattr(info, "vmem_capacity_bytes", 0) or 0)
        for attr in ("num_cores", "num_tensorcores", "tensorcore_count", "cores_per_chip"):
            v = getattr(info, attr, None)
            if isinstance(v, int) and v > 1:
                n_cores = v
                break
    except Exception:
        pass
    if vmem_cap <= 0:
        vmem_cap = 64 * _MIB          # assume the smallest generation (v7x per-TC VMEM)
    # Keep 2x in + 2x out double buffers + f32 temporaries + Mosaic scratch under physical VMEM.
    vmem_limit = min(vmem_cap - 16 * _MIB, 100 * _MIB)
    # Per-buffer tile target: ~8 MiB on 64 MiB parts (v7x), ~12 MiB on 128 MiB parts (v5e/v6e).
    tile_target = max(4 * _MIB, min(vmem_limit // 6, 12 * _MIB))
    return vmem_limit, tile_target, n_cores


def _dim_semantics(n_axes):
    _, _, n_cores = _hw_params()
    if n_cores > 1:
        # Actually distribute grid steps across TensorCores on megacore parts (v7x).
        return (pltpu.CORE_PARALLEL,) + (pltpu.PARALLEL,) * (n_axes - 1)
    return ("parallel",) * n_axes


def _sublane_gran(itemsize):
    # native sublane packing: 8 rows for 4B dtypes, 16 for 2B (bf16), 32 for 1B
    return 8 * max(1, 4 // max(itemsize, 1))


def _eff_bytes(itemsize):
    # count the in-kernel f32 working copy of sub-32-bit inputs
    return itemsize + (4 if itemsize < 4 else 0)


def _pick_tile(total, bytes_per_unit, gran):
    """Largest tile (multiple of `gran` units along the tiled axis) within the per-buffer
    budget; force >=2 grid steps only on multi-TensorCore parts so CORE_PARALLEL can shard."""
    _, tile_target, n_cores = _hw_params()
    t = max(gran, int(tile_target // max(bytes_per_unit, 1)))
    t = (t // gran) * gran
    if t >= total:
        if n_cores > 1 and total > gran:
            half = -(-total // 2)
            half = ((half + gran - 1) // gran) * gran
            if half < total:
                return half
        return total
    return t


# ---------------------------------------------------------------------------
# Folded-path constants
# ---------------------------------------------------------------------------

def _fold_params(C):
    """Fold k = lcm(C,128)//C rows into one lane-dense row of width W = lcm(C,128)."""
    if C % 128 == 0:
        return None                       # already lane-dense: generic path is fine
    g = math.gcd(C, 128)
    k = 128 // g
    W = k * C
    if W > 1024:                          # folding too wide / k too large to be worth it
        return None
    return k, W


@functools.lru_cache(maxsize=None)
def _segment_matrices(C, k):
    """0/1 segment-indicator matrix S (W,k) and its transpose (k,W), built once."""
    W = k * C
    seg = (np.arange(W)[:, None] // C) == np.arange(k)[None, :]
    S = jnp.asarray(seg.astype(np.float32))
    ST = jnp.asarray(seg.T.astype(np.float32))
    return S, ST


def _make_folded_consts(C, weight, bias):
    fold = _fold_params(C)
    if fold is None:
        return None
    k, W = fold
    S, ST = _segment_matrices(C, k)
    wf = jnp.tile(jnp.asarray(weight, jnp.float32).reshape(1, C), (1, k))
    bf = jnp.tile(jnp.asarray(bias, jnp.float32).reshape(1, C), (1, k))
    return (k, W, S, ST, wf, bf)


# ---------------------------------------------------------------------------
# Kernels
# ---------------------------------------------------------------------------

def _ln_lanes_kernel(x_ref, w_ref, b_ref, o_ref, *, eps):
    """channels_last, generic: reduce over the lane (last) axis. Two-pass variance."""
    x = x_ref[...].astype(jnp.float32)                        # (TR, C)
    mean = jnp.mean(x, axis=-1, keepdims=True)
    xc = x - mean
    var = jnp.mean(xc * xc, axis=-1, keepdims=True)
    inv = lax.rsqrt(var + eps)                                 # EUP
    y = xc * inv * w_ref[...].astype(jnp.float32) + b_ref[...].astype(jnp.float32)
    o_ref[...] = y.astype(o_ref.dtype)


def _ln_folded_kernel(x_ref, w_ref, b_ref, s_ref, st_ref, o_ref, *, inv_c, eps):
    """channels_last, folded lane-dense: k original rows per W=lcm(C,128)-wide row.
    Segmented (per-original-row) reductions via small MXU matmuls; two-pass variance."""
    x = x_ref[...].astype(jnp.float32)                         # (TR, W)
    s = s_ref[...]                                             # (W, k)
    st = st_ref[...]                                           # (k, W)
    mean_k = jnp.dot(x, s, preferred_element_type=jnp.float32) * inv_c        # (TR, k)
    mean = jnp.dot(mean_k, st, preferred_element_type=jnp.float32)            # (TR, W)
    xc = x - mean
    var_k = jnp.dot(xc * xc, s, preferred_element_type=jnp.float32) * inv_c   # (TR, k)
    inv_k = lax.rsqrt(var_k + eps)
    inv = jnp.dot(inv_k, st, preferred_element_type=jnp.float32)              # (TR, W)
    y = xc * inv * w_ref[...].astype(jnp.float32) + b_ref[...].astype(jnp.float32)
    o_ref[...] = y.astype(o_ref.dtype)


def _ln_channels_first_kernel(x_ref, w_ref, b_ref, o_ref, *, eps):
    """channels_first: reduce over the C (sublane) axis of a (TN, C, THW) block."""
    x = x_ref[...].astype(jnp.float32)                         # (TN, C, THW)
    mean = jnp.mean(x, axis=1, keepdims=True)
    xc = x - mean
    var = jnp.mean(xc * xc, axis=1, keepdims=True)
    inv = lax.rsqrt(var + eps)
    y = xc * inv * w_ref[...].astype(jnp.float32) + b_ref[...].astype(jnp.float32)
    o_ref[...] = y.astype(o_ref.dtype)


# ---------------------------------------------------------------------------
# Wrappers
# ---------------------------------------------------------------------------

def _layer_norm_channels_last(x, weight, bias, eps, folded_consts=None):
    C = x.shape[-1]
    orig_shape = x.shape
    x2d = x.reshape(-1, C)
    R = x2d.shape[0]
    itemsize = jnp.dtype(x.dtype).itemsize
    eff = _eff_bytes(itemsize)
    gran = _sublane_gran(itemsize)
    vmem_limit, _, _ = _hw_params()

    if folded_consts is None:
        folded_consts = _make_folded_consts(C, weight, bias)

    if folded_consts is not None:
        k, W, S, ST, wf, bf = folded_consts
        pad = (-R) % k
        xp = jnp.pad(x2d, ((0, pad), (0, 0))) if pad else x2d   # pad < k rows: keep lane-dense path
        rf = (R + pad) // k
        xf = xp.reshape(rf, W)                                   # pure row-major view
        tr = _pick_tile(rf, W * eff, gran)
        out = pl.pallas_call(
            functools.partial(_ln_folded_kernel, inv_c=1.0 / C, eps=eps),
            out_shape=jax.ShapeDtypeStruct((rf, W), x.dtype),
            grid_spec=pltpu.PrefetchScalarGridSpec(
                num_scalar_prefetch=0,
                grid=(pl.cdiv(rf, tr),),
                in_specs=[
                    pl.BlockSpec((tr, W), lambda i: (i, 0)),
                    pl.BlockSpec((1, W), lambda i: (0, 0)),
                    pl.BlockSpec((1, W), lambda i: (0, 0)),
                    pl.BlockSpec((W, k), lambda i: (0, 0)),
                    pl.BlockSpec((k, W), lambda i: (0, 0)),
                ],
                out_specs=pl.BlockSpec((tr, W), lambda i: (i, 0)),
            ),
            compiler_params=pltpu.CompilerParams(
                dimension_semantics=_dim_semantics(1),
                vmem_limit_bytes=vmem_limit),
        )(xf, wf, bf, S, ST)
        out = out.reshape(rf * k, C)
        if pad:
            out = out[:R]
        return out.reshape(orig_shape)

    # Generic lane-reduction path (C a multiple of 128, or folding too wide).
    w2d = jnp.asarray(weight, jnp.float32).reshape(1, C)
    b2d = jnp.asarray(bias, jnp.float32).reshape(1, C)
    tr = _pick_tile(R, C * eff, gran)
    out = pl.pallas_call(
        functools.partial(_ln_lanes_kernel, eps=eps),
        out_shape=jax.ShapeDtypeStruct((R, C), x.dtype),
        grid_spec=pltpu.PrefetchScalarGridSpec(
            num_scalar_prefetch=0,
            grid=(pl.cdiv(R, tr),),                              # ragged last block handled by Pallas
            in_specs=[
                pl.BlockSpec((tr, C), lambda i: (i, 0)),
                pl.BlockSpec((1, C), lambda i: (0, 0)),
                pl.BlockSpec((1, C), lambda i: (0, 0)),
            ],
            out_specs=pl.BlockSpec((tr, C), lambda i: (i, 0)),
        ),
        compiler_params=pltpu.CompilerParams(
            dimension_semantics=_dim_semantics(1),
            vmem_limit_bytes=vmem_limit),
    )(x2d, w2d, b2d)
    return out.reshape(orig_shape)


def _layer_norm_channels_first(x, weight, bias, eps):
    N, C, H, W = x.shape
    HW = H * W
    x3 = x.reshape(N, C, HW)                                     # pure view, no transpose
    w3 = jnp.asarray(weight, jnp.float32).reshape(1, C, 1)
    b3 = jnp.asarray(bias, jnp.float32).reshape(1, C, 1)
    itemsize = jnp.dtype(x.dtype).itemsize
    eff = _eff_bytes(itemsize)
    vmem_limit, tile_target, _ = _hw_params()

    per_image_bytes = C * HW * eff
    if per_image_bytes <= tile_target:
        # Batch-major tiling: whole images per block -> one fully contiguous DMA per step.
        tn = _pick_tile(N, per_image_bytes, 1)
        grid = (pl.cdiv(N, tn),)
        in_specs = [
            pl.BlockSpec((tn, C, HW), lambda n: (n, 0, 0)),
            pl.BlockSpec((1, C, 1), lambda n: (0, 0, 0)),
            pl.BlockSpec((1, C, 1), lambda n: (0, 0, 0)),
        ]
        out_specs = pl.BlockSpec((tn, C, HW), lambda n: (n, 0, 0))
        sems = _dim_semantics(1)
    else:
        # Large images: per-image spatial tiling, lane axis = H*W.
        thw = _pick_tile(HW, C * eff, 128)
        grid = (N, pl.cdiv(HW, thw))
        in_specs = [
            pl.BlockSpec((1, C, thw), lambda n, j: (n, 0, j)),
            pl.BlockSpec((1, C, 1), lambda n, j: (0, 0, 0)),
            pl.BlockSpec((1, C, 1), lambda n, j: (0, 0, 0)),
        ]
        out_specs = pl.BlockSpec((1, C, thw), lambda n, j: (n, 0, j))
        sems = _dim_semantics(2)

    out = pl.pallas_call(
        functools.partial(_ln_channels_first_kernel, eps=eps),
        out_shape=jax.ShapeDtypeStruct((N, C, HW), x.dtype),
        grid_spec=pltpu.PrefetchScalarGridSpec(
            num_scalar_prefetch=0, grid=grid,
            in_specs=in_specs, out_specs=out_specs),
        compiler_params=pltpu.CompilerParams(
            dimension_semantics=sems, vmem_limit_bytes=vmem_limit),
    )(x3, w3, b3)
    return out.reshape(N, C, H, W)


class PallasLayerNorm:
    """Mirror of the PyTorch ConvNeXt LayerNorm module (forward pass)."""

    def __init__(self, normalized_shape, eps=1e-6, data_format="channels_last"):
        if data_format not in ("channels_last", "channels_first"):
            raise NotImplementedError
        self.weight = jnp.ones((normalized_shape,), dtype=jnp.float32)
        self.bias = jnp.zeros((normalized_shape,), dtype=jnp.float32)
        self.eps = eps
        self.data_format = data_format
        self.normalized_shape = (normalized_shape,)
        self._fold_key = None
        self._fold_consts = None

    def _folded_consts(self, C):
        key = (C, id(self.weight), id(self.bias))
        if key != self._fold_key:
            self._fold_consts = _make_folded_consts(C, self.weight, self.bias)
            self._fold_key = key
        return self._fold_consts

    def __call__(self, x):
        if self.data_format == "channels_last":
            return _layer_norm_channels_last(
                x, self.weight, self.bias, self.eps,
                folded_consts=self._folded_consts(x.shape[-1]))
        return _layer_norm_channels_first(x, self.weight, self.bias, self.eps)


# ---------------------------------------------------------------------------
# References + test
# ---------------------------------------------------------------------------

def _ref_layernorm_channels_first(x, w, b, eps):
    u = jnp.mean(x, axis=1, keepdims=True)
    s = jnp.mean((x - u) ** 2, axis=1, keepdims=True)
    xn = (x - u) / jnp.sqrt(s + eps)
    return w[None, :, None, None] * xn + b[None, :, None, None]


def _ref_layernorm_channels_last(x, w, b, eps):
    u = jnp.mean(x, axis=-1, keepdims=True)
    s = jnp.mean((x - u) ** 2, axis=-1, keepdims=True)
    xn = (x - u) / jnp.sqrt(s + eps)
    return xn * w + b


if __name__ == "__main__":
    key = jax.random.PRNGKey(0)
    k1, k2, k3, k4, k5, kw, kb = jax.random.split(key, 7)

    # --- channels_first: (N, C, H, W) = (2, 4, 16, 16), batch-major tiling ---
    x_cf = jax.random.normal(k1, (2, 4, 16, 16), dtype=jnp.float32)
    ln_cf = PallasLayerNorm(4, eps=1e-6, data_format="channels_first")
    ln_cf.weight = jax.random.normal(kw, (4,), dtype=jnp.float32)
    ln_cf.bias = jax.random.normal(kb, (4,), dtype=jnp.float32)
    y_cf = jax.block_until_ready(ln_cf(x_cf))
    ref_cf = _ref_layernorm_channels_first(x_cf, ln_cf.weight, ln_cf.bias, 1e-6)
    assert y_cf.shape == x_cf.shape
    assert jnp.max(jnp.abs(y_cf - ref_cf)) < 1e-4

    # --- channels_first with non-multiple-of-128 spatial: (2, 8, 7, 9) ---
    x_cf2 = jax.random.normal(k2, (2, 8, 7, 9), dtype=jnp.float32)
    ln_cf2 = PallasLayerNorm(8, eps=1e-6, data_format="channels_first")
    y_cf2 = jax.block_until_ready(ln_cf2(x_cf2))
    ref_cf2 = _ref_layernorm_channels_first(x_cf2, ln_cf2.weight, ln_cf2.bias, 1e-6)
    assert y_cf2.shape == x_cf2.shape
    assert jnp.max(jnp.abs(y_cf2 - ref_cf2)) < 1e-4

    # --- channels_last, tiny C (folded lane-dense, no pad): (2, 16, 16, 4) ---
    x_cl = jax.random.normal(k3, (2, 16, 16, 4), dtype=jnp.float32)
    ln_cl = PallasLayerNorm(4, eps=1e-6, data_format="channels_last")
    ln_cl.weight = ln_cf.weight
    ln_cl.bias = ln_cf.bias
    y_cl = jax.block_until_ready(ln_cl(x_cl))
    ref_cl = _ref_layernorm_channels_last(x_cl, ln_cl.weight, ln_cl.bias, 1e-6)
    assert y_cl.shape == x_cl.shape
    assert jnp.max(jnp.abs(y_cl - ref_cl)) < 1e-4

    # --- channels_last, C=96 (generalized fold k=4, W=384) with ragged rows: (2, 7, 9, 96) ---
    x_cl2 = jax.random.normal(k4, (2, 7, 9, 96), dtype=jnp.float32)
    ln_cl2 = PallasLayerNorm(96, eps=1e-6, data_format="channels_last")
    y_cl2 = jax.block_until_ready(ln_cl2(x_cl2))
    ref_cl2 = _ref_layernorm_channels_last(x_cl2, ln_cl2.weight, ln_cl2.bias, 1e-6)
    assert y_cl2.shape == x_cl2.shape
    assert jnp.max(jnp.abs(y_cl2 - ref_cl2)) < 1e-4

    # --- channels_last, C=128 (already lane-dense, generic path): (2, 5, 3, 128) ---
    x_cl3 = jax.random.normal(k5, (2, 5, 3, 128), dtype=jnp.float32)
    ln_cl3 = PallasLayerNorm(128, eps=1e-6, data_format="channels_last")
    y_cl3 = jax.block_until_ready(ln_cl3(x_cl3))
    ref_cl3 = _ref_layernorm_channels_last(x_cl3, ln_cl3.weight, ln_cl3.bias, 1e-6)
    assert y_cl3.shape == x_cl3.shape
    assert jnp.max(jnp.abs(y_cl3 - ref_cl3)) < 1e-4

    print("KERNEL_OK")
</pallas_src>

<mosaic_0001>
module attributes {stable_mosaic.version = 11 : i64} {
  func.func @_ln_channels_first_kernel(%arg0: i32, %arg1: memref<2x4x256xf32, #tpu.memory_space<vmem>>, %arg2: memref<1x4x1xf32, #tpu.memory_space<vmem>>, %arg3: memref<1x4x1xf32, #tpu.memory_space<vmem>>, %arg4: memref<2x4x256xf32, #tpu.memory_space<vmem>>) attributes {dimension_semantics = [#tpu.dimension_semantics<parallel>], iteration_bounds = array<i64: 1>, scalar_prefetch = 0 : i64, scratch_operands = 0 : i64, tpu.core_type = #tpu.core_type<tc>, window_params = [{transform_indices = @transform_0, window_bounds = array<i64: 2, 4, 256>}, {pipeline_mode = #tpu.pipeline_mode<synchronous>, transform_indices = @transform_1, window_bounds = array<i64: 1, 4, 1>}, {pipeline_mode = #tpu.pipeline_mode<synchronous>, transform_indices = @transform_2, window_bounds = array<i64: 1, 4, 1>}, {transform_indices = @transform_3, window_bounds = array<i64: 2, 4, 256>}]} {
    %c0 = arith.constant 0 : index
    %c0_0 = arith.constant 0 : index
    %c0_1 = arith.constant 0 : index
    %0 = vector.load %arg1[%c0, %c0_0, %c0_1] : memref<2x4x256xf32, #tpu.memory_space<vmem>>, vector<2x4x256xf32>
    %cst = arith.constant dense<0.000000e+00> : vector<2x256xf32>
    %1 = vector.multi_reduction <add>, %0, %cst [1] : vector<2x4x256xf32> to vector<2x256xf32>
    %2 = vector.shape_cast %1 : vector<2x256xf32> to vector<2x1x256xf32>
    %cst_2 = arith.constant 4.000000e+00 : f32
    %3 = vector.broadcast %cst_2 : f32 to vector<2x1x256xf32>
    %4 = arith.divf %2, %3 : vector<2x1x256xf32>
    %5 = vector.broadcast %4 : vector<2x1x256xf32> to vector<2x4x256xf32>
    %6 = arith.subf %0, %5 : vector<2x4x256xf32>
    %7 = arith.mulf %6, %6 : vector<2x4x256xf32>
    %cst_3 = arith.constant dense<0.000000e+00> : vector<2x256xf32>
    %8 = vector.multi_reduction <add>, %7, %cst_3 [1] : vector<2x4x256xf32> to vector<2x256xf32>
    %9 = vector.shape_cast %8 : vector<2x256xf32> to vector<2x1x256xf32>
    %cst_4 = arith.constant 4.000000e+00 : f32
    %10 = vector.broadcast %cst_4 : f32 to vector<2x1x256xf32>
    %11 = arith.divf %9, %10 : vector<2x1x256xf32>
    %cst_5 = arith.constant 9.99999997E-7 : f32
    %12 = vector.broadcast %cst_5 : f32 to vector<2x1x256xf32>
    %13 = arith.addf %11, %12 : vector<2x1x256xf32>
    %14 = math.rsqrt %13 : vector<2x1x256xf32>
    %15 = vector.broadcast %14 : vector<2x1x256xf32> to vector<2x4x256xf32>
    %16 = arith.mulf %6, %15 : vector<2x4x256xf32>
    %c0_6 = arith.constant 0 : index
    %c0_7 = arith.constant 0 : index
    %c0_8 = arith.constant 0 : index
    %17 = vector.load %arg2[%c0_6, %c0_7, %c0_8] : memref<1x4x1xf32, #tpu.memory_space<vmem>>, vector<1x4x1xf32>
    %18 = vector.broadcast %17 : vector<1x4x1xf32> to vector<2x4x256xf32>
    %19 = arith.mulf %16, %18 : vector<2x4x256xf32>
    %c0_9 = arith.constant 0 : index
    %c0_10 = arith.constant 0 : index
    %c0_11 = arith.constant 0 : index
    %20 = vector.load %arg3[%c0_9, %c0_10, %c0_11] : memref<1x4x1xf32, #tpu.memory_space<vmem>>, vector<1x4x1xf32>
    %21 = vector.broadcast %20 : vector<1x4x1xf32> to vector<2x4x256xf32>
    %22 = arith.addf %19, %21 : vector<2x4x256xf32>
    %c0_12 = arith.constant 0 : index
    %c0_13 = arith.constant 0 : index
    %c0_14 = arith.constant 0 : index
    %23 = vector.load %arg4[%c0_12, %c0_13, %c0_14] : memref<2x4x256xf32, #tpu.memory_space<vmem>>, vector<2x4x256xf32>
    tpu.vector_store %arg4[%c0_12, %c0_13, %c0_14], %22 {strides = array<i32>} : memref<2x4x256xf32, #tpu.memory_space<vmem>>, vector<2x4x256xf32>,
    return
  }
  func.func @transform_0(%arg0: i32) -> (i32, i32, i32) {
    %c0_i32 = arith.constant 0 : i32
    %c0_i32_0 = arith.constant 0 : i32
    %c0_i32_1 = arith.constant 0 : i32
    return %arg0, %c0_i32, %c0_i32_0 : i32, i32, i32
  }
  func.func @transform_1(%arg0: i32) -> (i32, i32, i32) {
    %c0_i32 = arith.constant 0 : i32
    %c0_i32_0 = arith.constant 0 : i32
    %c0_i32_1 = arith.constant 0 : i32
    %c0_i32_2 = arith.constant 0 : i32
    return %c0_i32, %c0_i32_0, %c0_i32_1 : i32, i32, i32
  }
  func.func @transform_2(%arg0: i32) -> (i32, i32, i32) {
    %c0_i32 = arith.constant 0 : i32
    %c0_i32_0 = arith.constant 0 : i32
    %c0_i32_1 = arith.constant 0 : i32
    %c0_i32_2 = arith.constant 0 : i32
    return %c0_i32, %c0_i32_0, %c0_i32_1 : i32, i32, i32
  }
  func.func @transform_3(%arg0: i32) -> (i32, i32, i32) {
    %c0_i32 = arith.constant 0 : i32
    %c0_i32_0 = arith.constant 0 : i32
    %c0_i32_1 = arith.constant 0 : i32
    return %arg0, %c0_i32, %c0_i32_0 : i32, i32, i32
  }
}

</mosaic_0001>

<bundles_post_ra>
// kernel: tpu_custom_call.1
= control target key start
LH: loop header
LB: loop body
LE: loop exit
PB: predicated region body
PF: predicated region fallthrough
CT: control target
= control target key end

     0   :  { %8 = vsyncpa [#allocation3], 0  ;;  %s301_s0 = inlined_call_operand.hbm [shape: f32[2,4,256], index: 0, kind: input, shape index: {}]   ;;  %s302_s1 = inlined_call_operand.vmem [shape: f32[1,4,1], index: 1, kind: input, shape index: {}]   ;;  %s303_s2 = inlined_call_operand.vmem [shape: f32[1,4,1], index: 2, kind: input, shape index: {}]   ;;  %s304_s3 = inlined_call_operand.hbm [shape: f32[2,4,256], index: 3, kind: output, shape index: {}]  }
   0x1   :  { %9 = vsyncpa [#allocation4], 0  ;;  %s249_s12 = smov [#allocation2]  }
   0x2   :  { %s15_s13 = sshll.u32 %s249_s12, 4  ;;  %s16_s13 = int_to_ptr.vmem [resolvable:$true] %s15_s13 }
   0x3   :  { %s213_s14 = scalar_lea.vmem %s16_s13, 256  ;;  %p218_p1 = scmp.lt.s32.totalorder %s16_s13, %s16_s13 }
   0x4   :  { %p214_p0 = scmp.ne.s32.totalorder %s16_s13, %s213_s14  ;;  %p219_p2 = scmp.lt.s32.totalorder %s213_s14, %s213_s14 }
   0x6   :  { %p220_p3 = por %p219_p2, %p218_p1 }
   0x8   :  { %p221_p4 = pnand %p220_p3, %p214_p0 }
   0xa   :  { %224 = shalt.err (!%p221_p4)
}
   0xb   :  { %s250_s15 = smov 128   ;;  %s251_s16 = smov 8  }
   0xc   :  { %21 = dma.hbm_to_vmem [thread:$0]  %s301_s0, 256, %s16_s13, [#allocation3], %s250_s15, %s250_s15, %s251_s16  }
   0xd   :  { %245 = dma.done.wait [#allocation3], 256  }
   0xe   :  { %246 = vsyncadd [#allocation3], 4294967040  ;;  %v252_v0 = vmov 0   ;;  %v139_v1 = vld [vmem:[%s302_s1] sm:$0xf]  ;;  %v30_v4 = vld [vmem:[#allocation2 + $0x8] sm:$0xff] }
   0xf   :  { %194 = vset.pattern.permute.xlu0 %v252_v0  ;;  %v154_v2 = vld [vmem:[%s303_s2] sm:$0xf]  ;;  %vm37_vm0 = vcmask 1043456   ;;  %v34_v6 = vcombine.high %v30_v4, %v30_v4  ;;  %s254_s0 = smov [#allocation5]  }
  0x10   :  { %142 = vperm.xlu0 %194, %v139_v1   ;;  %v29_v3 = vld [vmem:[#allocation2] sm:$0xff]  ;;  %v52_v9 = vsel %vm37_vm0, %v30_v4, 0.0  ;;  %s176_s1 = sshll.u32 %s254_s0, 4  ;;  %s177_s1 = int_to_ptr.vmem [resolvable:$true] %s176_s1 }
  0x11   :  { %v33_v5 = vcombine.high %v29_v3, %v29_v3  ;;  %v38_v7 = vsel %vm37_vm0, %v29_v3, 0.0  ;;  %v59_v10 = vsel %vm37_vm0, %v34_v6, 0.0  ;;  %v53_v13 = vrot.slane %v52_v9, 4  ;;  %s225_s2 = scalar_lea.vmem %s177_s1, 256  ;;  %p230_p6 = scmp.lt.s32.totalorder %s177_s1, %s177_s1 }
  0x12   :  { %v39_v11 = vrot.slane %v38_v7, 4  ;;  %v60_v14 = vrot.slane %v59_v10, 4  ;;  %p226_p5 = scmp.ne.s32.totalorder %s177_s1, %s225_s2  ;;  %p231_p7 = scmp.lt.s32.totalorder %s225_s2, %s225_s2 }
  0x13   :  { %v45_v8 = vsel %vm37_vm0, %v33_v5, 0.0  ;;  %v54_v17 = vadd.f32 %v53_v13, %v52_v9 }
  0x14   :  { %157 = vperm.xlu0 %194, %v154_v2   ;;  %v46_v12 = vrot.slane %v45_v8, 4  ;;  %v40_v15 = vadd.f32 %v39_v11, %v38_v7  ;;  %v61_v18 = vadd.f32 %v60_v14, %v59_v10  ;;  %p232_p8 = por %p231_p7, %p230_p6 }
  0x15   :  { %v55_v21 = vrot.slane %v54_v17, 2 }
  0x16   :  { %v47_v16 = vadd.f32 %v46_v12, %v45_v8  ;;  %v41_v19 = vrot.slane %v40_v15, 2  ;;  %v62_v22 = vrot.slane %v61_v18, 2  ;;  %p233_p9 = pnand %p232_p8, %p226_p5 }
  0x17   :  { %v56_v25 = vadd.f32 %v55_v21, %v54_v17  ;;  %v147_v21 = vlaneseq }
  0x18   :  { %v48_v20 = vrot.slane %v47_v16, 2  ;;  %v42_v23 = vadd.f32 %v41_v19, %v40_v15  ;;  %v63_v26 = vadd.f32 %v62_v22, %v61_v18  ;;  %v253_v19 = vmov 839922192  }
  0x19   :  { %v57_v29 = vrot.slane %v56_v25, 1 }
  0x1a   :  { %v49_v24 = vadd.f32 %v48_v20, %v47_v16  ;;  %v43_v27 = vrot.slane %v42_v23, 1  ;;  %v64_v30 = vrot.slane %v63_v26, 1  ;;  %v145_v20 = vunpack.c.l.s4 %v253_v19 }
  0x1b   :  { %v58_v33 = vadd.f32 %v57_v29, %v56_v25 }
  0x1c   :  { %v50_v28 = vrot.slane %v49_v24, 1  ;;  %v44_v31 = vadd.f32 %v43_v27, %v42_v23  ;;  %v65_v34 = vadd.f32 %v64_v30, %v63_v26  ;;  %v146_v25 = vunpack.c.0.s8 %v145_v20 }
  0x1d   :  { %v69_v37 = vmul.f32 0.25, %v58_v33  ;;  %v148_v26 = vshrl.u32 %v147_v21, 7 }
  0x1e   :  { %v51_v32 = vadd.f32 %v50_v28, %v49_v24  ;;  %v67_v35 = vmul.f32 0.25, %v44_v31  ;;  %v70_v38 = vmul.f32 0.25, %v65_v34 }
  0x1f   :  { %v149_v28 = vsub.s32 %v146_v25, %v148_v26 }
  0x20   :  { %v68_v36 = vmul.f32 0.25, %v51_v32  ;;  %v76_v40 = vcombine.low %v69_v37, %v70_v38 }
  0x22   :  { %v75_v39 = vcombine.low %v67_v35, %v68_v36  ;;  %v80_v42 = vsub.f32 %v30_v4, %v76_v40 }
  0x24   :  { %v79_v41 = vsub.f32 %v29_v3, %v75_v39  ;;  %v82_v44 = vmul.f32 %v80_v42, %v80_v42 }
  0x26   :  { %v81_v43 = vmul.f32 %v79_v41, %v79_v41  ;;  %v86_v46 = vcombine.high %v82_v44, %v82_v44  ;;  %v103_v48 = vsel %vm37_vm0, %v82_v44, 0.0 }
  0x27   :  { %v104_v52 = vrot.slane %v103_v48, 4 }
  0x28   :  { %v85_v45 = vcombine.high %v81_v43, %v81_v43  ;;  %v89_v47 = vsel %vm37_vm0, %v81_v43, 0.0  ;;  %v110_v51 = vsel %vm37_vm0, %v86_v46, 0.0 }
  0x29   :  { %v90_v50 = vrot.slane %v89_v47, 4  ;;  %v111_v54 = vrot.slane %v110_v51, 4  ;;  %v105_v56 = vadd.f32 %v104_v52, %v103_v48 }
  0x2a   :  { %v96_v49 = vsel %vm37_vm0, %v85_v45, 0.0 }
  0x2b   :  { %v97_v53 = vrot.slane %v96_v49, 4  ;;  %v91_v55 = vadd.f32 %v90_v50, %v89_v47  ;;  %v112_v58 = vadd.f32 %v111_v54, %v110_v51  ;;  %v106_v60 = vrot.slane %v105_v56, 2 }
  0x2d   :  { %v98_v57 = vadd.f32 %v97_v53, %v96_v49  ;;  %v92_v59 = vrot.slane %v91_v55, 2  ;;  %v113_v62 = vrot.slane %v112_v58, 2  ;;  %v107_v0 = vadd.f32 %v106_v60, %v105_v56 }
  0x2f   :  { %v99_v61 = vrot.slane %v98_v57, 2  ;;  %v93_v63 = vadd.f32 %v92_v59, %v91_v55  ;;  %v114_v2 = vadd.f32 %v113_v62, %v112_v58  ;;  %v108_v4 = vrot.slane %v107_v0, 1 }
  0x31   :  { %v100_v1 = vadd.f32 %v99_v61, %v98_v57  ;;  %v94_v3 = vrot.slane %v93_v63, 1  ;;  %v115_v6 = vrot.slane %v114_v2, 1  ;;  %v109_v8 = vadd.f32 %v108_v4, %v107_v0 }
  0x33   :  { %v101_v5 = vrot.slane %v100_v1, 1  ;;  %v95_v7 = vadd.f32 %v94_v3, %v93_v63  ;;  %v116_v10 = vadd.f32 %v115_v6, %v114_v2  ;;  %v119_v12 = vmul.f32 0.25, %v109_v8 }
  0x35   :  { %v102_v9 = vadd.f32 %v101_v5, %v100_v1  ;;  %v117_v11 = vmul.f32 0.25, %v95_v7  ;;  %v120_v14 = vmul.f32 0.25, %v116_v10  ;;  %v123_v16 = vadd.f32 1e-06, %v119_v12 }
  0x37   :  { %v118_v13 = vmul.f32 0.25, %v102_v9  ;;  %v121_v15 = vadd.f32 1e-06, %v117_v11  ;;  %v124_v18 = vadd.f32 1e-06, %v120_v14 }
  0x39   :  { %v122_v17 = vadd.f32 1e-06, %v118_v13  ;;  %197 = vrsqrt.f32 %v121_v15 }
  0x3a   :  { %199 = vrsqrt.f32 %v123_v16 }
  0x3b   :  { %201 = vrsqrt.f32 %v122_v17 }
  0x3c   :  { %203 = vrsqrt.f32 %v124_v18 }
  0x46   :  { %v198_v22 = vpop.eup %197 }
  0x47   :  { %v200_v23 = vpop.eup %199 }
  0x48   :  { %v202_v24 = vpop.eup %201 }
  0x49   :  { %v204_v27 = vpop.eup %203  ;;  %v133_v29 = vcombine.low %v198_v22, %v202_v24 }
  0x4a   :  { %v134_v30 = vcombine.low %v200_v23, %v204_v27 }
  0x4b   :  { %v137_v32 = vmul.f32 %v133_v29, %v79_v41 }
  0x4c   :  { %v138_v33 = vmul.f32 %v134_v30, %v80_v42 }
  0x8b   :  { %v143_v31 = vpop.permute.xlu0 %142 }
  0x8c   :  { %v150_v34 = vrot.slane %v143_v31, %v149_v28 }
  0x8e   :  { %v152_v36 = vmul.f32 %v150_v34, %v137_v32  ;;  %v153_v37 = vmul.f32 %v150_v34, %v138_v33 }
  0x8f   :  { %v158_v35 = vpop.permute.xlu0 %157 }
  0x90   :  { %v165_v38 = vrot.slane %v158_v35, %v149_v28 }
  0x92   :  { %v167_v39 = vadd.f32 %v165_v38, %v152_v36  ;;  %v168_v40 = vadd.f32 %v165_v38, %v153_v37 }
  0x94   :  { %169 = vst [vmem:[#allocation5] sm:$0xff] %v167_v39  ;;  %170 = vst [vmem:[#allocation5 + $0x8] sm:$0xff] %v168_v40 }
  0x95   :  { %236 = shalt.err (!%p233_p9)
}
  0x96   :  { %182 = dma.vmem_to_hbm [thread:$0]  %s177_s1, 256, %s304_s3, [#allocation4], %s250_s15, %s250_s15, %s251_s16  }
  0x97   :  { %247 = dma.done.wait [#allocation4], 256  }
  0x98   :  { %248 = vsyncadd [#allocation4], 4294967040 }
  0x99   :  { %186 = vsyncpa [#allocation3], 1 }
  0x9a   :  { %187 = vsyncpa [#allocation4], 1 }

</bundles_post_ra>
